<compile_context>
chip_gen: v7x
topology: tpu7x:2x2x1
jax: 0.10.0
libtpu: 0.0.40
codegen_flags: <defaults>
</compile_context>

<pallas_src>
import functools
import math

import jax
import jax.numpy as jnp
import numpy as np
from jax.experimental import pallas as pl
from jax.experimental.pallas import tpu as pltpu


# ---------------------------------------------------------------------------
# Helpers
# ---------------------------------------------------------------------------
def _cdiv(a, b):
    return -(-a // b)


def _conv_taps(KH, KW):
    ph, pw = KH // 2, KW // 2
    return [(kh - ph, kw - pw) for kh in range(KH) for kw in range(KW)]


def _make_tap_masks(H, W, KH, KW):
    """(KH*KW, H*W) {0,1} masks: is source pixel (h+di, w+dj) inside the image."""
    hh, ww = np.meshgrid(np.arange(H), np.arange(W), indexing="ij")
    rows = []
    for di, dj in _conv_taps(KH, KW):
        valid = (hh + di >= 0) & (hh + di < H) & (ww + dj >= 0) & (ww + dj < W)
        rows.append(valid.reshape(-1).astype(np.float32))
    return np.stack(rows, 0)


def _expand_masks(ens_masks, batch_size):
    # torch: masks.repeat(1, m).view(-1, D); first `rest` expanded rows re-appended.
    E, _ = ens_masks.shape
    m = batch_size // E
    rest = batch_size % E
    expanded = jnp.repeat(ens_masks, m, axis=0)
    if rest > 0:
        expanded = jnp.concatenate([expanded, expanded[:rest]], axis=0)
    return expanded  # (batch_size, D)


def _row_pad(n, itemsize):
    """Sublane-padded row count for an n-row slab of the given itemsize."""
    per = 8 * max(1, 4 // itemsize)
    return _cdiv(n, per) * per


def _pick_tiling(B, Cin, Cout, HW, n_taps, mxu_isz, ew_isz, out_isz,
                 budget_bytes=20 * 1024 * 1024):
    """Samples per grid step (bt), grid length and padded batch size.

    Counts the real per-step VMEM: double-buffered x / tap-mask / output
    blocks, the single-buffered im2col scratch, and the in-kernel temporaries
    (x value, one rolled copy, f32 GEMM result).  Budget (20 MiB) is safe for
    v7x's 32 MiB scoped VMEM and leaves compiler headroom on v5e/v6e.
    """
    bytes_per_lane = (
        2 * _row_pad(Cin, mxu_isz) * mxu_isz          # x block (double buffered)
        + 2 * _row_pad(n_taps, ew_isz) * ew_isz       # tap-mask block
        + 2 * _row_pad(Cout, out_isz) * out_isz       # output block
        + _row_pad(n_taps * Cin, mxu_isz) * mxu_isz   # im2col scratch
        + 2 * _row_pad(Cin, ew_isz) * ew_isz          # x value + one rolled temp
        + _row_pad(Cout, 4) * 4                       # f32 GEMM result
    )
    # Block last dim bt*HW must be a multiple of 128.
    align = 128 // math.gcd(HW, 128)
    bt = max(align, (budget_bytes // (bytes_per_lane * HW)) // align * align)
    bt = min(bt, _cdiv(B, align) * align)
    # v7x megacore: make sure the "parallel" batch axis has >= 2 steps.
    if _cdiv(B, bt) < 2 and _cdiv(B, align) >= 2:
        bt = _cdiv(_cdiv(B, 2), align) * align
    nblk = _cdiv(B, bt)
    # Prefer an even step count (balanced across the two v7x TensorCores).
    if nblk > 1 and nblk % 2:
        bt2 = _cdiv(_cdiv(B, nblk + 1), align) * align
        if bt2 >= align and _cdiv(B, bt2) % 2 == 0:
            bt, nblk = bt2, _cdiv(B, bt2)
    return bt, nblk, nblk * bt


# ---------------------------------------------------------------------------
# Pallas kernel: fused conv via in-VMEM im2col + one wide-N GEMM per block
# ---------------------------------------------------------------------------
def _make_kernel(taps, W, Nblk, Cin, mxu_dtype, ew_dtype):
    def kernel(x_ref, w_ref, b_ref, tap_ref, o_ref, col_ref):
        # x_ref  : (Cin, Nblk)        input chunk, Nblk = bt*H*W lanes
        # w_ref  : (Cout, K)          weights, K = KH*KW*Cin, k = tap*Cin + c
        # b_ref  : (Cout, 1)          bias (f32)
        # tap_ref: (KH*KW, Nblk)      {0,1} boundary masks, tiled per sample
        # o_ref  : (Cout, Nblk)       output chunk
        # col_ref: (K, Nblk)          im2col scratch (MXU rhs)
        x = x_ref[...].astype(ew_dtype)
        for t, (di, dj) in enumerate(taps):
            s = di * W + dj                              # lane shift of this tap
            if s == 0:
                xs = x                                   # center tap: always valid
            else:
                # shifted[n] = x[n + s]; out-of-image / wrapped lanes zeroed by
                # the per-sample-periodic tap mask (valid pixels never cross a
                # sample boundary, so the flat roll is safe).
                xs = pltpu.roll(x, (-s) % Nblk, axis=1) * tap_ref[pl.ds(t, 1), :]
            col_ref[pl.ds(t * Cin, Cin), :] = xs.astype(mxu_dtype)

        # Single (Cout x K) @ (K x Nblk) GEMM, f32 accumulation on the MXU.
        acc = jnp.dot(w_ref[...], col_ref[...],
                      preferred_element_type=jnp.float32)
        o_ref[...] = (acc + b_ref[...]).astype(o_ref.dtype)

    return kernel


# ---------------------------------------------------------------------------
# Public wrapper (Conv2d branch of BatchEnsembleMaskedWrapper.forward)
# ---------------------------------------------------------------------------
@functools.partial(
    jax.jit,
    static_argnames=("where", "compute_dtype", "out_dtype", "elementwise_f32"))
def batch_ensemble_masked_conv2d(x_nchw, weight, bias, ens_masks, *, where,
                                 compute_dtype=jnp.float32,
                                 out_dtype=jnp.float32,
                                 elementwise_f32=False):
    """Forward of BatchEnsembleMaskedWrapper wrapping
    Conv2d(stride=1, padding='same', dilation=1, groups=1).

    compute_dtype: dtype of the MXU operands and of x in HBM (bf16 halves HBM
        read + VMEM on every generation; the v5e/v6e/v7x MXUs all take bf16).
    elementwise_f32: keep the roll / tap-mask path in f32 (recommended on v5e,
        which has no bf16 VPU) while still using compute_dtype MXU operands.
    out_dtype: kernel writeback / return dtype (bf16 halves the dominant HBM
        write term and the largest double-buffered VMEM block).
    """
    assert where in ("input", "output")
    B, Cin, H, W = x_nchw.shape
    Cout, Cin_w, KH, KW = weight.shape
    assert Cin_w == Cin, "groups != 1 not supported by this kernel"
    assert KH % 2 == 1 and KW % 2 == 1, "odd kernel / 'same' padding assumed"
    HW = H * W
    taps = _conv_taps(KH, KW)
    K = len(taps) * Cin

    mxu_dtype = jnp.dtype(compute_dtype)
    ew_dtype = (jnp.dtype(jnp.float32)
                if (elementwise_f32 or mxu_dtype == jnp.dtype(jnp.float32))
                else mxu_dtype)
    odtype = jnp.dtype(out_dtype)

    expanded = _expand_masks(ens_masks.astype(jnp.float32), B)  # (B, Cin|Cout)

    bt, nblk, B_pad = _pick_tiling(B, Cin, Cout, HW, len(taps),
                                   mxu_dtype.itemsize, ew_dtype.itemsize,
                                   odtype.itemsize)
    Nblk = bt * HW

    # ---- input-side layout plumbing (mask multiply + cast fuse into the copy)
    xm = x_nchw.astype(jnp.float32)
    if where == "input":
        xm = xm * expanded[:, :, None, None]
    x_k = jnp.transpose(xm.reshape(B, Cin, HW), (1, 0, 2))       # (Cin, B, HW)
    if B_pad != B:
        x_k = jnp.pad(x_k, ((0, 0), (0, B_pad - B), (0, 0)))
    x_k = x_k.reshape(Cin, B_pad * HW).astype(mxu_dtype)

    # (Cout, Cin, KH, KW) -> (Cout, KH*KW*Cin): column k = tap*Cin + c.
    w2 = jnp.transpose(weight, (0, 2, 3, 1)).reshape(Cout, K).astype(mxu_dtype)
    b2 = bias.astype(jnp.float32).reshape(Cout, 1)
    taps_arr = jnp.asarray(np.tile(_make_tap_masks(H, W, KH, KW), (1, bt)),
                           dtype=ew_dtype)                       # (KH*KW, Nblk)

    kernel = _make_kernel(taps, W, Nblk, Cin, mxu_dtype, ew_dtype)
    cost = pl.CostEstimate(
        flops=2 * B_pad * HW * K * Cout,
        transcendentals=0,
        bytes_accessed=int(Cin * B_pad * HW * mxu_dtype.itemsize
                           + Cout * B_pad * HW * odtype.itemsize
                           + len(taps) * Nblk * ew_dtype.itemsize
                           + Cout * K * mxu_dtype.itemsize),
    )

    out = pl.pallas_call(
        kernel,
        out_shape=jax.ShapeDtypeStruct((Cout, B_pad * HW), odtype),
        grid_spec=pltpu.PrefetchScalarGridSpec(
            num_scalar_prefetch=0,
            grid=(nblk,),
            in_specs=[
                pl.BlockSpec((Cin, Nblk), lambda i: (0, i)),      # x chunk
                pl.BlockSpec((Cout, K), lambda i: (0, 0)),        # weights (resident)
                pl.BlockSpec((Cout, 1), lambda i: (0, 0)),        # bias (resident)
                pl.BlockSpec((len(taps), Nblk), lambda i: (0, 0)),  # tap masks (resident)
            ],
            out_specs=pl.BlockSpec((Cout, Nblk), lambda i: (0, i)),
            scratch_shapes=[pltpu.VMEM((K, Nblk), mxu_dtype)],    # im2col rhs
        ),
        compiler_params=pltpu.CompilerParams(
            dimension_semantics=("parallel",),
            vmem_limit_bytes=32 * 1024 * 1024,
        ),
        cost_estimate=cost,
    )(x_k, w2, b2, taps_arr)

    # ---- output-side layout plumbing (mask multiply fuses into the copy)
    o = out.reshape(Cout, B_pad, HW)[:, :B]
    o = jnp.transpose(o, (1, 0, 2)).astype(jnp.float32)          # (B, Cout, HW)
    if where == "output":
        o = o * expanded[:, :, None]
    return o.reshape(B, Cout, H, W).astype(odtype)


# ---------------------------------------------------------------------------
# Pure-JAX reference (module semantics, f32) for correctness checks
# ---------------------------------------------------------------------------
def _ref_forward(x, weight, bias, ens_masks, where):
    B = x.shape[0]
    KH, KW = weight.shape[2], weight.shape[3]
    expanded = _expand_masks(ens_masks, B)
    if where == "input":
        x = x * expanded[:, :, None, None]
    o = jax.lax.conv_general_dilated(
        x, weight, window_strides=(1, 1),
        padding=((KH // 2, KH // 2), (KW // 2, KW // 2)),
        dimension_numbers=("NCHW", "OIHW", "NCHW"))
    o = o + bias[None, :, None, None]
    if where == "output":
        o = o * expanded[:, :, None, None]
    return o


# ---------------------------------------------------------------------------
if __name__ == "__main__":
    key = jax.random.PRNGKey(0)
    k_x, k_w, k_b, k_min, k_mout = jax.random.split(key, 5)

    # Wrapped layer: nn.Conv2d(4, 8, kernel_size=3, stride=1, padding=1)
    B, Cin, H, W = 2, 4, 16, 16
    Cout, KH, KW = 8, 3, 3
    ensemble = 2

    x = jax.random.normal(k_x, (B, Cin, H, W), jnp.float32)
    weight = jax.random.normal(k_w, (Cout, Cin, KH, KW), jnp.float32) * 0.1
    bias = jax.random.normal(k_b, (Cout,), jnp.float32) * 0.1

    # TODO(synk): Trainable{Beta,Laplace,...} distribution classes are not
    # provided; masks are deterministic per-ensemble parameter vectors.
    masks_in = jax.random.uniform(k_min, (ensemble, Cin), jnp.float32, 0.5, 1.5)
    masks_out = jax.random.uniform(k_mout, (ensemble, Cout), jnp.float32, 0.5, 1.5)

    ok = True
    for where, masks in (("output", masks_out), ("input", masks_in)):
        ref = jax.block_until_ready(_ref_forward(x, weight, bias, masks, where))

        # Exact f32 path.
        out = jax.block_until_ready(batch_ensemble_masked_conv2d(
            x, weight, bias, masks, where=where))
        if not jnp.allclose(out, ref, atol=1e-4, rtol=1e-4):
            ok = False
            print("f32 mismatch (%s): max abs diff %e"
                  % (where, float(jnp.max(jnp.abs(out - ref)))))

        # v6e/v7x path: bf16 MXU operands + bf16 elementwise + bf16 writeback.
        out_bf = jax.block_until_ready(batch_ensemble_masked_conv2d(
            x, weight, bias, masks, where=where,
            compute_dtype=jnp.bfloat16, out_dtype=jnp.bfloat16))
        if not jnp.allclose(out_bf.astype(jnp.float32), ref,
                            atol=7.5e-2, rtol=7.5e-2):
            ok = False
            print("bf16 mismatch (%s): max abs diff %e"
                  % (where, float(jnp.max(jnp.abs(out_bf.astype(jnp.float32) - ref)))))

    # v5e-style path: bf16 MXU operands, f32 elementwise (roll / mask) path.
    ref_in = jax.block_until_ready(_ref_forward(x, weight, bias, masks_in, "input"))
    out_v5 = jax.block_until_ready(batch_ensemble_masked_conv2d(
        x, weight, bias, masks_in, where="input",
        compute_dtype=jnp.bfloat16, elementwise_f32=True))
    if not jnp.allclose(out_v5, ref_in, atol=7.5e-2, rtol=7.5e-2):
        ok = False
        print("bf16/f32-ew mismatch: max abs diff %e"
              % float(jnp.max(jnp.abs(out_v5 - ref_in))))

    if ok:
        print("KERNEL_OK")
</pallas_src>

<mosaic_0001>
module attributes {stable_mosaic.version = 11 : i64} {
  func.func @kernel(%arg0: i32, %arg1: memref<4x256xf32, #tpu.memory_space<vmem>>, %arg2: memref<8x36xf32, #tpu.memory_space<vmem>>, %arg3: memref<8x1xf32, #tpu.memory_space<vmem>>, %arg4: memref<9x256xf32, #tpu.memory_space<vmem>>, %arg5: memref<8x256xf32, #tpu.memory_space<vmem>>, %arg6: memref<36x256xf32, #tpu.memory_space<vmem>>) attributes {dimension_semantics = [#tpu.dimension_semantics<parallel>], iteration_bounds = array<i64: 2>, scalar_prefetch = 0 : i64, scratch_operands = 1 : i64, tpu.core_type = #tpu.core_type<tc>, window_params = [{transform_indices = @transform_0, window_bounds = array<i64: 4, 256>}, {pipeline_mode = #tpu.pipeline_mode<synchronous>, transform_indices = @transform_1, window_bounds = array<i64: 8, 36>}, {pipeline_mode = #tpu.pipeline_mode<synchronous>, transform_indices = @transform_2, window_bounds = array<i64: 8, 1>}, {pipeline_mode = #tpu.pipeline_mode<synchronous>, transform_indices = @transform_3, window_bounds = array<i64: 9, 256>}, {transform_indices = @transform_4, window_bounds = array<i64: 8, 256>}]} {
    %c0 = arith.constant 0 : index
    %c0_0 = arith.constant 0 : index
    %0 = vector.load %arg1[%c0, %c0_0] : memref<4x256xf32, #tpu.memory_space<vmem>>, vector<4x256xf32>
    %c17_i32 = arith.constant 17 : i32
    %1 = tpu.dynamic_rotate %0 by %c17_i32 dim 1 : vector<4x256xf32>, i32 -> vector<4x256xf32>
    %c0_1 = arith.constant 0 : index
    %c0_2 = arith.constant 0 : index
    %2 = vector.load %arg4[%c0_1, %c0_2] : memref<9x256xf32, #tpu.memory_space<vmem>>, vector<1x256xf32>
    %3 = vector.broadcast %2 : vector<1x256xf32> to vector<4x256xf32>
    %4 = arith.mulf %1, %3 : vector<4x256xf32>
    %c0_3 = arith.constant 0 : index
    %c0_4 = arith.constant 0 : index
    %5 = vector.load %arg6[%c0_3, %c0_4] : memref<36x256xf32, #tpu.memory_space<vmem>>, vector<4x256xf32>
    tpu.vector_store %arg6[%c0_3, %c0_4], %4 {strides = array<i32>} : memref<36x256xf32, #tpu.memory_space<vmem>>, vector<4x256xf32>,
    %c16_i32 = arith.constant 16 : i32
    %6 = tpu.dynamic_rotate %0 by %c16_i32 dim 1 : vector<4x256xf32>, i32 -> vector<4x256xf32>
    %c1 = arith.constant 1 : index
    %c0_5 = arith.constant 0 : index
    %7 = vector.load %arg4[%c1, %c0_5] : memref<9x256xf32, #tpu.memory_space<vmem>>, vector<1x256xf32>
    %8 = vector.broadcast %7 : vector<1x256xf32> to vector<4x256xf32>
    %9 = arith.mulf %6, %8 : vector<4x256xf32>
    %c4 = arith.constant 4 : index
    %c0_6 = arith.constant 0 : index
    %10 = vector.load %arg6[%c4, %c0_6] : memref<36x256xf32, #tpu.memory_space<vmem>>, vector<4x256xf32>
    tpu.vector_store %arg6[%c4, %c0_6], %9 {strides = array<i32>} : memref<36x256xf32, #tpu.memory_space<vmem>>, vector<4x256xf32>,
    %c15_i32 = arith.constant 15 : i32
    %11 = tpu.dynamic_rotate %0 by %c15_i32 dim 1 : vector<4x256xf32>, i32 -> vector<4x256xf32>
    %c2 = arith.constant 2 : index
    %c0_7 = arith.constant 0 : index
    %12 = vector.load %arg4[%c2, %c0_7] : memref<9x256xf32, #tpu.memory_space<vmem>>, vector<1x256xf32>
    %13 = vector.broadcast %12 : vector<1x256xf32> to vector<4x256xf32>
    %14 = arith.mulf %11, %13 : vector<4x256xf32>
    %c8 = arith.constant 8 : index
    %c0_8 = arith.constant 0 : index
    %15 = vector.load %arg6[%c8, %c0_8] : memref<36x256xf32, #tpu.memory_space<vmem>>, vector<4x256xf32>
    tpu.vector_store %arg6[%c8, %c0_8], %14 {strides = array<i32>} : memref<36x256xf32, #tpu.memory_space<vmem>>, vector<4x256xf32>,
    %c1_i32 = arith.constant 1 : i32
    %16 = tpu.dynamic_rotate %0 by %c1_i32 dim 1 : vector<4x256xf32>, i32 -> vector<4x256xf32>
    %c3 = arith.constant 3 : index
    %c0_9 = arith.constant 0 : index
    %17 = vector.load %arg4[%c3, %c0_9] : memref<9x256xf32, #tpu.memory_space<vmem>>, vector<1x256xf32>
    %18 = vector.broadcast %17 : vector<1x256xf32> to vector<4x256xf32>
    %19 = arith.mulf %16, %18 : vector<4x256xf32>
    %c12 = arith.constant 12 : index
    %c0_10 = arith.constant 0 : index
    %20 = vector.load %arg6[%c12, %c0_10] : memref<36x256xf32, #tpu.memory_space<vmem>>, vector<4x256xf32>
    tpu.vector_store %arg6[%c12, %c0_10], %19 {strides = array<i32>} : memref<36x256xf32, #tpu.memory_space<vmem>>, vector<4x256xf32>,
    %c16 = arith.constant 16 : index
    %c0_11 = arith.constant 0 : index
    %21 = vector.load %arg6[%c16, %c0_11] : memref<36x256xf32, #tpu.memory_space<vmem>>, vector<4x256xf32>
    tpu.vector_store %arg6[%c16, %c0_11], %0 {strides = array<i32>} : memref<36x256xf32, #tpu.memory_space<vmem>>, vector<4x256xf32>,
    %c255_i32 = arith.constant 255 : i32
    %22 = tpu.dynamic_rotate %0 by %c255_i32 dim 1 : vector<4x256xf32>, i32 -> vector<4x256xf32>
    %c5 = arith.constant 5 : index
    %c0_12 = arith.constant 0 : index
    %23 = vector.load %arg4[%c5, %c0_12] : memref<9x256xf32, #tpu.memory_space<vmem>>, vector<1x256xf32>
    %24 = vector.broadcast %23 : vector<1x256xf32> to vector<4x256xf32>
    %25 = arith.mulf %22, %24 : vector<4x256xf32>
    %c20 = arith.constant 20 : index
    %c0_13 = arith.constant 0 : index
    %26 = vector.load %arg6[%c20, %c0_13] : memref<36x256xf32, #tpu.memory_space<vmem>>, vector<4x256xf32>
    tpu.vector_store %arg6[%c20, %c0_13], %25 {strides = array<i32>} : memref<36x256xf32, #tpu.memory_space<vmem>>, vector<4x256xf32>,
    %c241_i32 = arith.constant 241 : i32
    %27 = tpu.dynamic_rotate %0 by %c241_i32 dim 1 : vector<4x256xf32>, i32 -> vector<4x256xf32>
    %c6 = arith.constant 6 : index
    %c0_14 = arith.constant 0 : index
    %28 = vector.load %arg4[%c6, %c0_14] : memref<9x256xf32, #tpu.memory_space<vmem>>, vector<1x256xf32>
    %29 = vector.broadcast %28 : vector<1x256xf32> to vector<4x256xf32>
    %30 = arith.mulf %27, %29 : vector<4x256xf32>
    %c24 = arith.constant 24 : index
    %c0_15 = arith.constant 0 : index
    %31 = vector.load %arg6[%c24, %c0_15] : memref<36x256xf32, #tpu.memory_space<vmem>>, vector<4x256xf32>
    tpu.vector_store %arg6[%c24, %c0_15], %30 {strides = array<i32>} : memref<36x256xf32, #tpu.memory_space<vmem>>, vector<4x256xf32>,
    %c240_i32 = arith.constant 240 : i32
    %32 = tpu.dynamic_rotate %0 by %c240_i32 dim 1 : vector<4x256xf32>, i32 -> vector<4x256xf32>
    %c7 = arith.constant 7 : index
    %c0_16 = arith.constant 0 : index
    %33 = vector.load %arg4[%c7, %c0_16] : memref<9x256xf32, #tpu.memory_space<vmem>>, vector<1x256xf32>
    %34 = vector.broadcast %33 : vector<1x256xf32> to vector<4x256xf32>
    %35 = arith.mulf %32, %34 : vector<4x256xf32>
    %c28 = arith.constant 28 : index
    %c0_17 = arith.constant 0 : index
    %36 = vector.load %arg6[%c28, %c0_17] : memref<36x256xf32, #tpu.memory_space<vmem>>, vector<4x256xf32>
    tpu.vector_store %arg6[%c28, %c0_17], %35 {strides = array<i32>} : memref<36x256xf32, #tpu.memory_space<vmem>>, vector<4x256xf32>,
    %c239_i32 = arith.constant 239 : i32
    %37 = tpu.dynamic_rotate %0 by %c239_i32 dim 1 : vector<4x256xf32>, i32 -> vector<4x256xf32>
    %c8_18 = arith.constant 8 : index
    %c0_19 = arith.constant 0 : index
    %38 = vector.load %arg4[%c8_18, %c0_19] : memref<9x256xf32, #tpu.memory_space<vmem>>, vector<1x256xf32>
    %39 = vector.broadcast %38 : vector<1x256xf32> to vector<4x256xf32>
    %40 = arith.mulf %37, %39 : vector<4x256xf32>
    %c32 = arith.constant 32 : index
    %c0_20 = arith.constant 0 : index
    %41 = vector.load %arg6[%c32, %c0_20] : memref<36x256xf32, #tpu.memory_space<vmem>>, vector<4x256xf32>
    tpu.vector_store %arg6[%c32, %c0_20], %40 {strides = array<i32>} : memref<36x256xf32, #tpu.memory_space<vmem>>, vector<4x256xf32>,
    %c0_21 = arith.constant 0 : index
    %c0_22 = arith.constant 0 : index
    %42 = vector.load %arg2[%c0_21, %c0_22] : memref<8x36xf32, #tpu.memory_space<vmem>>, vector<8x36xf32>
    %c0_23 = arith.constant 0 : index
    %c0_24 = arith.constant 0 : index
    %43 = vector.load %arg6[%c0_23, %c0_24] : memref<36x256xf32, #tpu.memory_space<vmem>>, vector<36x256xf32>
    %cst = arith.constant dense<0.000000e+00> : vector<8x256xf32>
    %44 = tpu.matmul %42, %43, %cst {dimension_numbers = #tpu.dot_dimension_numbers<[1], [0], [0], [1], [0, 0, 1, 1], [], []>} : vector<8x36xf32>, vector<36x256xf32>, vector<8x256xf32> -> vector<8x256xf32>
    %c0_25 = arith.constant 0 : index
    %c0_26 = arith.constant 0 : index
    %45 = vector.load %arg3[%c0_25, %c0_26] : memref<8x1xf32, #tpu.memory_space<vmem>>, vector<8x1xf32>
    %46 = vector.broadcast %45 : vector<8x1xf32> to vector<8x256xf32>
    %47 = arith.addf %44, %46 : vector<8x256xf32>
    %c0_27 = arith.constant 0 : index
    %c0_28 = arith.constant 0 : index
    %48 = vector.load %arg5[%c0_27, %c0_28] : memref<8x256xf32, #tpu.memory_space<vmem>>, vector<8x256xf32>
    tpu.vector_store %arg5[%c0_27, %c0_28], %47 {strides = array<i32>} : memref<8x256xf32, #tpu.memory_space<vmem>>, vector<8x256xf32>,
    return
  }
  func.func @transform_0(%arg0: i32) -> (i32, i32) {
    %c0_i32 = arith.constant 0 : i32
    %c0_i32_0 = arith.constant 0 : i32
    return %c0_i32, %arg0 : i32, i32
  }
  func.func @transform_1(%arg0: i32) -> (i32, i32) {
    %c0_i32 = arith.constant 0 : i32
    %c0_i32_0 = arith.constant 0 : i32
    %c0_i32_1 = arith.constant 0 : i32
    return %c0_i32, %c0_i32_0 : i32, i32
  }
  func.func @transform_2(%arg0: i32) -> (i32, i32) {
    %c0_i32 = arith.constant 0 : i32
    %c0_i32_0 = arith.constant 0 : i32
    %c0_i32_1 = arith.constant 0 : i32
    return %c0_i32, %c0_i32_0 : i32, i32
  }
  func.func @transform_3(%arg0: i32) -> (i32, i32) {
    %c0_i32 = arith.constant 0 : i32
    %c0_i32_0 = arith.constant 0 : i32
    %c0_i32_1 = arith.constant 0 : i32
    return %c0_i32, %c0_i32_0 : i32, i32
  }
  func.func @transform_4(%arg0: i32) -> (i32, i32) {
    %c0_i32 = arith.constant 0 : i32
    %c0_i32_0 = arith.constant 0 : i32
    return %c0_i32, %arg0 : i32, i32
  }
}

</mosaic_0001>

<bundles_post_ra>
// kernel: batch_ensemble_masked_conv2d.1
= control target key start
LH: loop header
LB: loop body
LE: loop exit
PB: predicated region body
PF: predicated region fallthrough
CT: control target
= control target key end

     0   :  { %s673_s15 = smov 0   ;;  %s770_s0 = inlined_call_operand.vmem [shape: f32[4,512], index: 0, kind: input, shape index: {}]   ;;  %s771_s1 = inlined_call_operand.vmem [shape: f32[8,36], index: 1, kind: input, shape index: {}]   ;;  %s772_s2 = inlined_call_operand.vmem [shape: f32[8,1], index: 2, kind: input, shape index: {}]   ;;  %s773_s3 = inlined_call_operand.vmem [shape: f32[9,256], index: 3, kind: input, shape index: {}]   ;;  %s774_s4 = inlined_call_operand.vmem [shape: f32[8,512], index: 4, kind: output, shape index: {}]  }
   0x1 LB: > { %s581_s16 = sadd.s32 4294967295, %s636_s15   ;;  %p585_p0 = scmp.ge.s32.totalorder %s636_s15, 1  ;;  %s636_s15 = sphi %s673_s15, %s14_s15  }
   0x2   : > { %p163_p1 = scmp.lt.s32.totalorder %s636_s15, 3 }
   0x4   : > { %p164_p2 = pnand %p585_p0, %p163_p1 }
   0x5   : > { %s586_s17 = sshll.u32 (!%p164_p2), %s581_s16, 1  ;;  %s638_s22 = smov (!%p164_p2), 1   ;;  %v646_v2 = vmov (!%p164_p2), 0.0   ;;  %v435_v3 = vld [vmem:[%s772_s2] sm:$0xff] (!%p164_p2)  ;;  %v647_v4 = vmov (!%p164_p2), 0   ;;  %v209_v5 = vlaneseq (!%p164_p2)  ;;  %vm445_vm8 = vcmask (!%p164_p2), 1043456  }
   0x6   : > { %167 = sbr.rel (%p164_p2) target bundleno = 391 (0x187), region = 36  ;;  %p190_p3 = scmp.lt.s32.totalorder (!%p164_p2), %s586_s17, 3  ;;  %516 = vmatprep.mubr.f32.mxu0 (!%p164_p2), %v646_v2  ;;  %628 = vset.pattern.permute.xlu0 (!%p164_p2), %v647_v4  ;;  %v592_v10 = vld [vmem:[%s773_s3 + $0x3] ss:$8 sm:$0x3] (!%p164_p2)  ;;  %vm441_vm9 = vcmask (!%p164_p2), 293888  }
   0x7   : > { %s639_s23 = smov (!%p164_p2), 16   ;;  %s640_s24 = smov (!%p164_p2), 17   ;;  %v217_v6 = vshrl.u32 (!%p164_p2), %v209_v5, 7  ;;  %v690_v7 = vand.u32 (!%p164_p2), 127, %v209_v5 }
   0x8   : > { %s641_s25 = smov (!%p164_p2), 15   ;;  %s642_s26 = smov (!%p164_p2), 127   ;;  %v214_v15 = vld [vmem:[%s773_s3] ss:$8 sm:$0x3] (!%p164_p2) }
   0x9   : > { %s643_s27 = smov (!%p164_p2), 112   ;;  %s644_s28 = smov (!%p164_p2), 113   ;;  %v692_v8 = vsub.s32 (!%p164_p2), 0, %v217_v6  ;;  %v694_v9 = vsub.s32 (!%p164_p2), 1, %v217_v6  ;;  %vm288_vm0 = vcmp.lt.s32.totalorder (!%p164_p2), %v690_v7, 1  ;;  %vm211_vm1 = vcmp.lt.s32.totalorder (!%p164_p2), %v690_v7, 17 }
   0xa   : > { %s645_s29 = smov (!%p164_p2), 111   ;;  %v590_v16 = vld [vmem:[%s773_s3 + $0x1] ss:$8 sm:$0x3] (!%p164_p2)  ;;  %vm234_vm2 = vcmp.lt.s32.totalorder (!%p164_p2), %v690_v7, 16  ;;  %vm264_vm3 = vcmp.lt.s32.totalorder (!%p164_p2), %v690_v7, 15 }
   0xb   : > { %v297_v13 = vrot.slane (!%p164_p2), %v592_v10, %v692_v8  ;;  %v301_v14 = vrot.slane (!%p164_p2), %v592_v10, %v694_v9  ;;  %v219_v21 = vrot.slane (!%p164_p2), %v214_v15, %v692_v8  ;;  %v223_v22 = vrot.slane (!%p164_p2), %v214_v15, %v694_v9  ;;  %v591_v23 = vld [vmem:[%s773_s3 + $0x2] ss:$8 sm:$0x3] (!%p164_p2)  ;;  %v593_v42 = vld [vmem:[%s773_s3 + $0x5] ss:$8 sm:$0x3] (!%p164_p2) }
   0xc   : > { %v243_v26 = vrot.slane (!%p164_p2), %v590_v16, %v692_v8  ;;  %v247_v27 = vrot.slane (!%p164_p2), %v590_v16, %v694_v9  ;;  %v273_v32 = vrot.slane (!%p164_p2), %v591_v23, %v692_v8  ;;  %v277_v33 = vrot.slane (!%p164_p2), %v591_v23, %v694_v9  ;;  %v595_v53 = vld [vmem:[%s773_s3 + $0x7] ss:$8 sm:$0x3] (!%p164_p2)  ;;  %v594_v62 = vld [vmem:[%s773_s3 + $0x6] ss:$8 sm:$0x3] (!%p164_p2) }
   0xd   : > { %s776_s17 = smov (!%p190_p3, %s586_s17), 3  ;;  %vm320_vm4 = vcmp.lt.s32.totalorder %v690_v7, 127  ;;  %v329_v51 = vrot.slane %v593_v42, %v692_v8  ;;  %v333_v52 = vrot.slane %v593_v42, %v694_v9  ;;  %vm374_vm5 = vcmp.lt.s32.totalorder %v690_v7, 112 }
   0xe   : > { %s587_s18 = sshll.u32 %s776_s17, 2  ;;  %v383_v60 = vrot.slane %v595_v53, %v692_v8  ;;  %v387_v61 = vrot.slane %v595_v53, %v694_v9  ;;  %vm350_vm6 = vcmp.lt.s32.totalorder %v690_v7, 113  ;;  %v359_v10 = vrot.slane %v594_v62, %v692_v8 }
   0xf   : > { %s193_s21 = scalar_lea.vmem %s770_s0, %s587_s18  ;;  %vm404_vm7 = vcmp.lt.s32.totalorder %v690_v7, 111 }
  0x10   : > { %v201_v0 = vld [vmem:[%s193_s21] sm:$0xff] }
  0x11   : > { %284 = vrot.lane.b32.xlu1 %v201_v0, %s638_s22  ;;  %314 = vst [vmem:[#allocation2 + $0x20] sm:$0xf] %v201_v0  ;;  %230 = vrot.lane.b32.xlu0 %v201_v0, %s639_s23  ;;  %v203_v1 = vcombine.high %v201_v0, %v201_v0 }
  0x13   : > { %315 = vst [vmem:[#allocation2 + $0x28] sm:$0xf] %v203_v1 }
  0x15   : > { %205 = vrot.lane.b32.xlu0 %v201_v0, %s640_s24  ;;  %286 = vrot.lane.b32.xlu1 %v203_v1, %s638_s22 }
  0x19   : > { %207 = vrot.lane.b32.xlu1 %v203_v1, %s640_s24  ;;  %232 = vrot.lane.b32.xlu0 %v203_v1, %s639_s23 }
  0x1d   : > { %262 = vrot.lane.b32.xlu1 %v203_v1, %s641_s25  ;;  %260 = vrot.lane.b32.xlu0 %v201_v0, %s641_s25 }
  0x21   : > { %318 = vrot.lane.b32.xlu1 %v203_v1, %s642_s26  ;;  %316 = vrot.lane.b32.xlu0 %v201_v0, %s642_s26  ;;  %s589_s26 = sshll.u32 %s776_s17, 3 }
  0x25   : > { %372 = vrot.lane.b32.xlu1 %v203_v1, %s643_s27  ;;  %370 = vrot.lane.b32.xlu0 %v201_v0, %s643_s27 }
  0x29   : > { %348 = vrot.lane.b32.xlu1 %v203_v1, %s644_s28  ;;  %346 = vrot.lane.b32.xlu0 %v201_v0, %s644_s28 }
  0x2d   : > { %402 = vrot.lane.b32.xlu1 %v203_v1, %s645_s29  ;;  %400 = vrot.lane.b32.xlu0 %v201_v0, %s645_s29  ;;  %s199_s29 = scalar_lea.vmem %s774_s4, %s589_s26 }
  0x31   : > { %438 = vperm.xlu0 %628, %v435_v3  }
  0x83   : > { %v285_v11 = vpop.permute.xlu1 %284  ;;  %v231_v12 = vpop.permute.xlu0 %230 }
  0x87   : > { %v206_v17 = vpop.permute.xlu0 %205  ;;  %v287_v18 = vpop.permute.xlu1 %286 }
  0x88   : > { %v289_v19 = vsel %vm288_vm0, %v285_v11, %v287_v18  ;;  %v290_v20 = vsel %vm288_vm0, %v287_v18, %v285_v11  ;;  %v363_v11 = vrot.slane %v594_v62, %v694_v9 }
  0x89   : > { %v304_v24 = vmul.f32 %v297_v13, %v290_v20  ;;  %v305_v25 = vmul.f32 %v301_v14, %v289_v19  ;;  %v596_v13 = vld [vmem:[%s773_s3 + $0x10] ss:$8 sm:$0x3] }
  0x8b   : > { %v308_v28 = vrot.slane %v304_v24, 4  ;;  %v309_v29 = vrot.slane %v305_v25, 4  ;;  %v208_v30 = vpop.permute.xlu1 %207  ;;  %v233_v31 = vpop.permute.xlu0 %232 }
  0x8c   : > { %v212_v34 = vsel %vm211_vm1, %v206_v17, %v208_v30  ;;  %v213_v35 = vsel %vm211_vm1, %v208_v30, %v206_v17  ;;  %v235_v36 = vsel %vm234_vm2, %v231_v12, %v233_v31  ;;  %v236_v37 = vsel %vm234_vm2, %v233_v31, %v231_v12 }
  0x8d   : > { %312 = vst [vmem:[#allocation2 + $0x10] sm:$0xf0] %v308_v28  ;;  %313 = vst [vmem:[#allocation2 + $0x18] sm:$0xf0] %v309_v29  ;;  %v226_v38 = vmul.f32 %v219_v21, %v213_v35  ;;  %v227_v39 = vmul.f32 %v223_v22, %v212_v34  ;;  %v250_v40 = vmul.f32 %v243_v26, %v236_v37 }
  0x8e   : > { %v251_v41 = vmul.f32 %v247_v27, %v235_v36  ;;  %v413_v27 = vrot.slane %v596_v13, %v692_v8  ;;  %v417_v28 = vrot.slane %v596_v13, %v694_v9 }
  0x8f   : > { %228 = vst [vmem:[#allocation2] sm:$0xf] %v226_v38  ;;  %229 = vst [vmem:[#allocation2 + $0x8] sm:$0xf] %v227_v39  ;;  %v254_v43 = vrot.slane %v250_v40, 4  ;;  %v263_v45 = vpop.permute.xlu1 %262  ;;  %v261_v46 = vpop.permute.xlu0 %260  ;;  %v424_v40 = vld [vmem:[%s771_s1] sm:$0xff] }
  0x90   : > { %v255_v44 = vrot.slane %v251_v41, 4  ;;  %v265_v47 = vsel %vm264_vm3, %v261_v46, %v263_v45  ;;  %v266_v48 = vsel %vm264_vm3, %v263_v45, %v261_v46 }
  0x91   : > { %258 = vst [vmem:[#allocation2] sm:$0xf0] %v254_v43  ;;  %v280_v49 = vmul.f32 %v273_v32, %v266_v48  ;;  %v281_v50 = vmul.f32 %v277_v33, %v265_v47 }
  0x92   : > { %259 = vst [vmem:[#allocation2 + $0x8] sm:$0xf0] %v255_v44 }
  0x93   : > { %282 = vst [vmem:[#allocation2 + $0x10] sm:$0xf] %v280_v49  ;;  %283 = vst [vmem:[#allocation2 + $0x18] sm:$0xf] %v281_v50  ;;  %v319_v54 = vpop.permute.xlu1 %318  ;;  %v317_v55 = vpop.permute.xlu0 %316 }
  0x94   : > { %v321_v56 = vsel %vm320_vm4, %v317_v55, %v319_v54  ;;  %v322_v57 = vsel %vm320_vm4, %v319_v54, %v317_v55 }
  0x95   : > { %v336_v58 = vmul.f32 %v329_v51, %v321_v56  ;;  %v337_v59 = vmul.f32 %v333_v52, %v322_v57 }
  0x97   : > { %v340_v63 = vrot.slane %v336_v58, 4  ;;  %v341_v0 = vrot.slane %v337_v59, 4  ;;  %v373_v1 = vpop.permute.xlu1 %372  ;;  %v371_v2 = vpop.permute.xlu0 %370 }
  0x98   : > { %v375_v3 = vsel %vm374_vm5, %v371_v2, %v373_v1  ;;  %v376_v4 = vsel %vm374_vm5, %v373_v1, %v371_v2  ;;  %v425_v15 = vld [vmem:[#allocation2] sm:$0xff] }
  0x99   : > { %344 = vst [vmem:[#allocation2 + $0x20] sm:$0xf0] %v340_v63  ;;  %345 = vst [vmem:[#allocation2 + $0x28] sm:$0xf0] %v341_v0  ;;  %v390_v5 = vmul.f32 %v383_v60, %v375_v3  ;;  %v391_v6 = vmul.f32 %v387_v61, %v376_v4  ;;  %v426_v12 = vld [vmem:[#allocation2 + $0x8] sm:$0xff] }
  0x9a   : > { %v428_v14 = vld [vmem:[#allocation2 + $0x18] sm:$0xff]  ;;  %v427_v16 = vld [vmem:[#allocation2 + $0x10] sm:$0xff] }
  0x9b   : > { %v394_v17 = vrot.slane %v390_v5, 4  ;;  %v395_v18 = vrot.slane %v391_v6, 4  ;;  %v349_v19 = vpop.permute.xlu1 %348  ;;  %v347_v20 = vpop.permute.xlu0 %346  ;;  %v602_v21 = vpack.c.bf16 %v428_v14, %v426_v12  ;;  %v604_v22 = vpack.c.bf16 %v427_v16, %v425_v15 }
  0x9c   : > { %v351_v23 = vsel %vm350_vm6, %v347_v20, %v349_v19  ;;  %v352_v24 = vsel %vm350_vm6, %v349_v19, %v347_v20 }
  0x9d   : > { %398 = vst [vmem:[#allocation2 + $0x30] sm:$0xf0] %v394_v17  ;;  %399 = vst [vmem:[#allocation2 + $0x38] sm:$0xf0] %v395_v18  ;;  %v366_v25 = vmul.f32 %v359_v10, %v351_v23  ;;  %v367_v26 = vmul.f32 %v363_v11, %v352_v24  ;;  %603 = vmatprep.subr.bf16.mxu0 %v602_v21 }
  0x9e   : > { %605 = vmatpush1.bf16.msra.mxu0 %v604_v22 }
  0x9f   : > { %368 = vst [vmem:[#allocation2 + $0x30] sm:$0xf] %v366_v25  ;;  %369 = vst [vmem:[#allocation2 + $0x38] sm:$0xf] %v367_v26  ;;  %v403_v29 = vpop.permute.xlu1 %402  ;;  %v401_v30 = vpop.permute.xlu0 %400 }
  0xa0   : > { %v405_v31 = vsel %vm404_vm7, %v401_v30, %v403_v29  ;;  %v406_v32 = vsel %vm404_vm7, %v403_v29, %v401_v30  ;;  %v430_v7 = vld [vmem:[#allocation2 + $0x28] sm:$0xff]  ;;  %v429_v36 = vld [vmem:[#allocation2 + $0x20] sm:$0xff] }
  0xa1   : > { %v420_v33 = vmul.f32 %v413_v27, %v405_v31  ;;  %v421_v34 = vmul.f32 %v417_v28, %v406_v32 }
  0xa3   : > { %422 = vst [vmem:[#allocation2 + $0x40] sm:$0xf] %v420_v33  ;;  %423 = vst [vmem:[#allocation2 + $0x48] sm:$0xf] %v421_v34 }
  0xa6   : > { %v432_v35 = vld [vmem:[#allocation2 + $0x38] sm:$0xff]  ;;  %v431_v37 = vld [vmem:[#allocation2 + $0x30] sm:$0xff] }
  0xa7   : > { %v606_v38 = vpack.c.bf16 %v432_v35, %v430_v7  ;;  %v608_v8 = vpack.c.bf16 %v431_v37, %v429_v36 }
  0xa9   : > { %607 = vmatprep.subr.bf16.mxu0 %v606_v38 }
  0xaa   : > { %609 = vmatpush1.bf16.msra.mxu0 %v608_v8  ;;  %v434_v9 = vld [vmem:[#allocation2 + $0x48] sm:$0xf]  ;;  %v433_v39 = vld [vmem:[#allocation2 + $0x40] sm:$0xf] }
  0xab   : > { %597 = vmatprep.subr.msk.mxu0 %vm445_vm8, %v434_v9 }
  0xae   : > { %598 = vmatpush1.msk.msra.mxu0 %vm445_vm8, %v433_v39 }
  0xaf   : > { %599 = vmatmul.mubr.msk.f32.vlgmr.msra.gmra.mrb[0].mxu0 %vm441_vm9, %v424_v40 }
  0xb0   : > { %v439_v41 = vpop.permute.xlu0 %438 }
 0x182   : > { %v518_v42 = vpop.f32.mrb[0].mxu0 }
 0x183   : > { %v519_v43 = vadd.f32 %v518_v42, %v439_v41  ;;  %v520_v44 = vpop.f32.mrb[1].mxu0 }
 0x184   : > { %v521_v45 = vadd.f32 %v520_v44, %v439_v41 }
 0x185   : > { %523 = vst [vmem:[%s199_s29] sm:$0xff] %v519_v43 }
 0x186   : > { %524 = vst [vmem:[%s199_s29 + $0x8] sm:$0xff] %v521_v45 }
 0x187 PF: > { %s14_s15 = sadd.s32 1, %s636_s15  }
 0x188   : > { %p11_p4 = scmp.ge.s32.totalorder %s14_s15, 4  }
 0x18a   :  { %13 = sbr.rel (!%p11_p4) target bundleno = 1 (0x1), region = 73 }

</bundles_post_ra>
